<compile_context>
chip_gen: v7x
topology: tpu7x:2x2x1
jax: 0.10.0
libtpu: 0.0.40
codegen_flags: <defaults>
</compile_context>

<pallas_src>
import jax
import jax.numpy as jnp
from jax import lax
from jax.experimental import pallas as pl
from jax.experimental.pallas import tpu as pltpu


def _round_up(n, m):
    return ((n + m - 1) // m) * m


def _vmem_capacity_bytes():
    """Best-effort per-core VMEM capacity; conservative fallback (v7x 64 MiB)."""
    try:
        info = pltpu.get_tpu_info()
        for name in ("vmem_capacity_bytes", "vmem_bytes", "vmem_size_bytes"):
            cap = getattr(info, name, None)
            if cap:
                return int(cap)
    except Exception:
        pass
    return 64 * 1024 * 1024


def _pick_batch_tile(B, D, H_pad, P_pad, vmem_budget):
    """Largest 8-aligned batch tile whose pipeline footprint fits the budget."""
    # Grid-invariant blocks (fetched once but still double-buffered):
    #   W bf16 [D, H_pad], b f32 [1, H_pad], f2n bf16 [P_pad, H_pad].
    fixed = 2 * (D * H_pad * 2 + H_pad * 4 + P_pad * H_pad * 2)
    # Per batch row: x tile (bf16, 2 bufs), out tile (f32, 2 bufs) and the f32
    # intermediates (f1 / f1n) the compiler keeps live in VMEM.
    per_row = 2 * (D * 2) + 2 * (P_pad * 4) + 2 * (H_pad * 4)
    cap = _round_up(max(B, 1), 8)
    for tb in (1024, 512, 256, 128, 64, 32, 16, 8):
        if tb <= cap and fixed + tb * per_row <= vmem_budget:
            return tb
    return 8


def _siamese_batch_kernel(x_ref, w_ref, b_ref, f2n_ref, o_ref):
    """One batch tile of the fused forward.

    x_ref   : [TB, D]        bf16 batch tile
    w_ref   : [D, H_pad]     bf16 weights (zero-padded columns)
    b_ref   : [1, H_pad]     f32 bias   (zero-padded columns)
    f2n_ref : [P_pad, H_pad] bf16 normalized prototype features (zero rows >= P)
    o_ref   : [TB, P_pad]    f32 cosine-similarity tile (lane-dense)
    """
    # Hidden layer: bf16 x bf16 -> f32 accumulation on the MXU.
    f1 = jnp.dot(x_ref[...], w_ref[...], preferred_element_type=jnp.float32)
    f1 = jnp.maximum(f1 + b_ref[...], 0.0)

    # Row normalization: single EUP rsqrt (eps^2 inside the sqrt ~= eps on the
    # norm; difference is O(1e-8) and far below bf16 matmul noise).
    inv = lax.rsqrt(jnp.sum(f1 * f1, axis=1, keepdims=True) + 1e-16)
    f1n = (f1 * inv).astype(jnp.bfloat16)

    # sims = f1n @ f2n.T as a contraction over the LAST dim of both operands:
    # feeds the MXU directly, no transpose/relayout.
    o_ref[...] = lax.dot_general(
        f1n, f2n_ref[...],
        dimension_numbers=(((1,), (1,)), ((), ())),
        preferred_element_type=jnp.float32)


def siamese_forward(x, exs, w, b, reps=1):
    """Fused SiameseNet forward. x:[B,D], exs:[P,D], w:[D,H], b:[1,H] (f32)."""
    B, D = x.shape
    P, _ = exs.shape
    _, H = w.shape

    P_pad = _round_up(max(P, 1), 128)   # lane-dense prototype / output axis
    H_pad = _round_up(H, 128)           # lane-dense hidden axis (exact zero pad)

    # ---- prototype branch (tiny: P = 10*reps rows), hoisted out of the grid
    #      so the batch axis can be fully "parallel" (megacore on v7x). -------
    hi = lax.Precision.HIGHEST
    f2 = jnp.maximum(
        jnp.dot(exs.astype(jnp.float32), w.astype(jnp.float32), precision=hi)
        + b.astype(jnp.float32), 0.0)
    f2n = f2 / (jnp.sqrt(jnp.sum(f2 * f2, axis=1, keepdims=True)) + 1e-8)
    f2n_p = jnp.zeros((P_pad, H_pad), jnp.bfloat16).at[:P, :H].set(
        f2n.astype(jnp.bfloat16))

    # ---- bf16 / lane-padded operands for the batch kernel --------------------
    x_bf = x.astype(jnp.bfloat16)
    w_p = jnp.zeros((D, H_pad), jnp.bfloat16).at[:, :H].set(
        w.astype(jnp.bfloat16))
    b_p = jnp.zeros((1, H_pad), jnp.float32).at[:, :H].set(
        b.astype(jnp.float32))

    # ---- tiling / VMEM budget (re-derived per device generation) ------------
    vmem_cap = _vmem_capacity_bytes()
    vmem_limit = min(vmem_cap * 3 // 4, 96 * 1024 * 1024)
    budget = min(vmem_cap * 6 // 10, 80 * 1024 * 1024)
    TB = _pick_batch_tile(B, D, H_pad, P_pad, budget)
    num_tiles = pl.cdiv(B, TB)

    cost = pl.CostEstimate(
        flops=2 * B * H_pad * (D + P_pad),
        transcendentals=B,
        bytes_accessed=(2 * B * D + 2 * D * H_pad + 4 * H_pad
                        + 2 * P_pad * H_pad + 4 * B * P_pad),
    )

    out = pl.pallas_call(
        _siamese_batch_kernel,
        out_shape=jax.ShapeDtypeStruct((B, P_pad), jnp.float32),
        grid_spec=pltpu.PrefetchScalarGridSpec(
            num_scalar_prefetch=0,
            grid=(num_tiles,),
            in_specs=[
                pl.BlockSpec((TB, D), lambda i: (i, 0)),           # x (tiled)
                pl.BlockSpec((D, H_pad), lambda i: (0, 0)),        # W (invariant)
                pl.BlockSpec((1, H_pad), lambda i: (0, 0)),        # b (invariant)
                pl.BlockSpec((P_pad, H_pad), lambda i: (0, 0)),    # f2n (invariant)
            ],
            out_specs=pl.BlockSpec((TB, P_pad), lambda i: (i, 0)),
        ),
        compiler_params=pltpu.CompilerParams(
            dimension_semantics=("parallel",),   # no cross-tile state -> megacore OK
            vmem_limit_bytes=int(vmem_limit),
        ),
        cost_estimate=cost,
    )(x_bf, w_p, b_p, f2n_p)

    sims = out[:, :P]
    if reps > 1:
        # pool_similarities_over_prototypes: MaxPool1d(reps, stride=reps)
        sims = jnp.max(sims.reshape(B, P // reps, reps), axis=-1)
    return sims


# Pure-JAX f32 reference (matches the PyTorch semantics) for correctness check.
def siamese_forward_ref(x, exs, w, b, reps=1):
    hi = lax.Precision.HIGHEST
    f1 = jnp.maximum(jnp.dot(x, w, precision=hi) + b, 0.0)
    f2 = jnp.maximum(jnp.dot(exs, w, precision=hi) + b, 0.0)
    f1n = f1 / (jnp.linalg.norm(f1, axis=1, keepdims=True) + 1e-8)
    f2n = f2 / (jnp.linalg.norm(f2, axis=1, keepdims=True) + 1e-8)
    sims = jnp.dot(f1n, f2n.T, precision=hi)
    if reps > 1:
        B, P = sims.shape
        sims = jnp.max(sims.reshape(B, P // reps, reps), axis=-1)
    return sims


if __name__ == "__main__":
    # Small deterministic setup: batch=2, flat input dim=64, hidden=32,
    # reps=1 -> 10 prototypes.
    B, D, H, REPS = 2, 64, 32, 1
    P = 10 * REPS

    key = jax.random.PRNGKey(0)
    kx, ke, kw, kb = jax.random.split(key, 4)

    x = jax.random.normal(kx, (B, D), dtype=jnp.float32)
    # siamese_init='unif': exs = rand(10*reps, D) - 0.5
    exs = jax.random.uniform(ke, (P, D), dtype=jnp.float32) - 0.5
    # model.features parameters (Linear D -> H)
    w = jax.random.normal(kw, (D, H), dtype=jnp.float32) * 0.1
    b = jax.random.normal(kb, (1, H), dtype=jnp.float32) * 0.1

    preds = jax.block_until_ready(siamese_forward(x, exs, w, b, reps=REPS))
    ref = siamese_forward_ref(x, exs, w, b, reps=REPS)

    assert preds.shape == (B, P), f"bad shape {preds.shape}"
    # bf16 MXU inputs (per perf review) -> relaxed tolerance vs the f32 ref.
    err = float(jnp.max(jnp.abs(preds - ref)))
    assert jnp.allclose(preds, ref, atol=2e-2, rtol=2e-2), f"max abs err {err}"

    # TODO(synk): prototype_dim > 0 spatial-similarity path (F.conv2d + spatial
    # max) is not exercised by the default config and is left unimplemented.
    print("KERNEL_OK")
</pallas_src>

<mosaic_0001>
module attributes {stable_mosaic.version = 11 : i64} {
  func.func @_siamese_batch_kernel(%arg0: i32, %arg1: memref<8x64xbf16, #tpu.memory_space<vmem>>, %arg2: memref<64x128xbf16, #tpu.memory_space<vmem>>, %arg3: memref<1x128xf32, #tpu.memory_space<vmem>>, %arg4: memref<128x128xbf16, #tpu.memory_space<vmem>>, %arg5: memref<8x128xf32, #tpu.memory_space<vmem>>) attributes {dimension_semantics = [#tpu.dimension_semantics<parallel>], iteration_bounds = array<i64: 1>, scalar_prefetch = 0 : i64, scratch_operands = 0 : i64, tpu.core_type = #tpu.core_type<tc>, window_params = [{transform_indices = @transform_0, window_bounds = array<i64: 8, 64>}, {pipeline_mode = #tpu.pipeline_mode<synchronous>, transform_indices = @transform_1, window_bounds = array<i64: 64, 128>}, {pipeline_mode = #tpu.pipeline_mode<synchronous>, transform_indices = @transform_2, window_bounds = array<i64: 1, 128>}, {pipeline_mode = #tpu.pipeline_mode<synchronous>, transform_indices = @transform_3, window_bounds = array<i64: 128, 128>}, {transform_indices = @transform_4, window_bounds = array<i64: 8, 128>}]} {
    %c0 = arith.constant 0 : index
    %c0_0 = arith.constant 0 : index
    %0 = vector.load %arg1[%c0, %c0_0] : memref<8x64xbf16, #tpu.memory_space<vmem>>, vector<8x64xbf16>
    %c0_1 = arith.constant 0 : index
    %c0_2 = arith.constant 0 : index
    %1 = vector.load %arg2[%c0_1, %c0_2] : memref<64x128xbf16, #tpu.memory_space<vmem>>, vector<64x128xbf16>
    %cst = arith.constant dense<0.000000e+00> : vector<8x128xf32>
    %2 = tpu.matmul %0, %1, %cst {dimension_numbers = #tpu.dot_dimension_numbers<[1], [0], [0], [1], [0, 0, 1, 1], [], []>} : vector<8x64xbf16>, vector<64x128xbf16>, vector<8x128xf32> -> vector<8x128xf32>
    %c0_3 = arith.constant 0 : index
    %c0_4 = arith.constant 0 : index
    %3 = vector.load %arg3[%c0_3, %c0_4] : memref<1x128xf32, #tpu.memory_space<vmem>>, vector<1x128xf32>
    %4 = vector.broadcast %3 : vector<1x128xf32> to vector<8x128xf32>
    %5 = arith.addf %2, %4 : vector<8x128xf32>
    %cst_5 = arith.constant 0.000000e+00 : f32
    %6 = vector.broadcast %cst_5 : f32 to vector<8x128xf32>
    %7 = arith.maximumf %5, %6 : vector<8x128xf32>
    %8 = arith.mulf %7, %7 : vector<8x128xf32>
    %cst_6 = arith.constant dense<0.000000e+00> : vector<8xf32>
    %9 = vector.multi_reduction <add>, %8, %cst_6 [1] : vector<8x128xf32> to vector<8xf32>
    %10 = vector.shape_cast %9 : vector<8xf32> to vector<8x1xf32>
    %cst_7 = arith.constant 1.000000e-16 : f32
    %11 = vector.broadcast %cst_7 : f32 to vector<8x1xf32>
    %12 = arith.addf %10, %11 : vector<8x1xf32>
    %13 = math.rsqrt %12 : vector<8x1xf32>
    %14 = vector.broadcast %13 : vector<8x1xf32> to vector<8x128xf32>
    %15 = arith.mulf %7, %14 : vector<8x128xf32>
    %16 = arith.truncf %15 : vector<8x128xf32> to vector<8x128xbf16>
    %c0_8 = arith.constant 0 : index
    %c0_9 = arith.constant 0 : index
    %17 = vector.load %arg4[%c0_8, %c0_9] : memref<128x128xbf16, #tpu.memory_space<vmem>>, vector<128x128xbf16>
    %cst_10 = arith.constant dense<0.000000e+00> : vector<8x128xf32>
    %18 = tpu.matmul %16, %17, %cst_10 {dimension_numbers = #tpu.dot_dimension_numbers<[1], [1], [0], [0], [0, 0, 1, 0], [], []>} : vector<8x128xbf16>, vector<128x128xbf16>, vector<8x128xf32> -> vector<8x128xf32>
    %c0_11 = arith.constant 0 : index
    %c0_12 = arith.constant 0 : index
    %19 = vector.load %arg5[%c0_11, %c0_12] : memref<8x128xf32, #tpu.memory_space<vmem>>, vector<8x128xf32>
    tpu.vector_store %arg5[%c0_11, %c0_12], %18 {strides = array<i32>} : memref<8x128xf32, #tpu.memory_space<vmem>>, vector<8x128xf32>,
    return
  }
  func.func @transform_0(%arg0: i32) -> (i32, i32) {
    %c0_i32 = arith.constant 0 : i32
    %c0_i32_0 = arith.constant 0 : i32
    return %arg0, %c0_i32 : i32, i32
  }
  func.func @transform_1(%arg0: i32) -> (i32, i32) {
    %c0_i32 = arith.constant 0 : i32
    %c0_i32_0 = arith.constant 0 : i32
    %c0_i32_1 = arith.constant 0 : i32
    return %c0_i32, %c0_i32_0 : i32, i32
  }
  func.func @transform_2(%arg0: i32) -> (i32, i32) {
    %c0_i32 = arith.constant 0 : i32
    %c0_i32_0 = arith.constant 0 : i32
    %c0_i32_1 = arith.constant 0 : i32
    return %c0_i32, %c0_i32_0 : i32, i32
  }
  func.func @transform_3(%arg0: i32) -> (i32, i32) {
    %c0_i32 = arith.constant 0 : i32
    %c0_i32_0 = arith.constant 0 : i32
    %c0_i32_1 = arith.constant 0 : i32
    return %c0_i32, %c0_i32_0 : i32, i32
  }
  func.func @transform_4(%arg0: i32) -> (i32, i32) {
    %c0_i32 = arith.constant 0 : i32
    %c0_i32_0 = arith.constant 0 : i32
    return %arg0, %c0_i32 : i32, i32
  }
}

</mosaic_0001>

<bundles_post_ra>
// kernel: tpu_custom_call.1
= control target key start
LH: loop header
LB: loop body
LE: loop exit
PB: predicated region body
PF: predicated region fallthrough
CT: control target
= control target key end

     0   :  { %9 = vsyncpa [#allocation3], 0  ;;  %s596_s0 = inlined_call_operand.hbm [shape: bf16[2,64], index: 0, kind: input, shape index: {}]   ;;  %s597_s1 = inlined_call_operand.hbm [shape: bf16[64,128], index: 1, kind: input, shape index: {}]   ;;  %s598_s2 = inlined_call_operand.vmem [shape: f32[1,128], index: 2, kind: input, shape index: {}]   ;;  %s599_s3 = inlined_call_operand.hbm [shape: bf16[128,128], index: 3, kind: input, shape index: {}]   ;;  %s600_s4 = inlined_call_operand.hbm [shape: f32[2,128], index: 4, kind: output, shape index: {}]  }
   0x1   :  { %10 = vsyncpa [#allocation6], 0 }
   0x2   :  { %11 = vsyncpa [#allocation4], 0 }
   0x3   :  { %16 = vsyncadd [#allocation3], 48  ;;  %s487_s15 = smov [#allocation5]   ;;  %s393_s19 = scalar_lea.hbm %s597_s1, 512 }
   0x4   :  { %s29_s16 = sshll.u32 %s487_s15, 4  ;;  %p394_p0 = scmp.ne.s32.totalorder %s597_s1, %s393_s19  ;;  %s30_s16 = int_to_ptr.vmem [resolvable:$true] %s29_s16 }
   0x5   :  { %p397_p1 = scmp.lt.u32.totalorder %s393_s19, %s597_s1 }
   0x7   :  { %p399_p2 = pnand %p397_p1, %p394_p0 }
   0x9   :  { %402 = shalt.err (!%p399_p2)
}
   0xa   :  { %s403_s24 = scalar_lea.vmem %s30_s16, 512  ;;  %p408_p4 = scmp.lt.s32.totalorder %s30_s16, %s30_s16 }
   0xb   :  { %p404_p3 = scmp.ne.s32.totalorder %s30_s16, %s403_s24  ;;  %p409_p5 = scmp.lt.s32.totalorder %s403_s24, %s403_s24 }
   0xd   :  { %p410_p6 = por %p409_p5, %p408_p4 }
   0xf   :  { %p411_p7 = pnand %p410_p6, %p404_p3 }
  0x11   :  { %414 = shalt.err (!%p411_p7)
}
  0x12   :  { %s488_s25 = smov 64   ;;  %s489_s26 = smov 4  }
  0x13   :  { %35 = dma.hbm_to_vmem [thread:$0]  %s597_s1, 512, %s30_s16, [#allocation6], %s488_s25, %s488_s25, %s489_s26  }
  0x14   :  { %s490_s29 = smov [#allocation2]   ;;  %s415_s7 = scalar_lea.hbm %s596_s0, 16 }
  0x15   :  { %s17_s30 = sshll.u32 %s490_s29, 4  ;;  %p416_p8 = scmp.ne.s32.totalorder %s596_s0, %s415_s7  ;;  %s18_s30 = int_to_ptr.vmem [resolvable:$true] %s17_s30 }
  0x16   :  { %p419_p9 = scmp.lt.u32.totalorder %s415_s7, %s596_s0 }
  0x18   :  { %p421_p10 = pnand %p419_p9, %p416_p8 }
  0x1a   :  { %424 = shalt.err (!%p421_p10)
}
  0x1b   :  { %s425_s12 = scalar_lea.vmem %s18_s30, 16  ;;  %s429_s1 = scalar_lea.vmem %s18_s30, 64 }
  0x1c   :  { %p426_p11 = scmp.ne.s32.totalorder %s18_s30, %s425_s12  ;;  %p430_p12 = scmp.lt.s32.totalorder %s18_s30, %s18_s30 }
  0x1d   :  { %p431_p13 = scmp.lt.s32.totalorder %s429_s1, %s425_s12 }
  0x1f   :  { %p432_p0 = por %p431_p13, %p430_p12 }
  0x21   :  { %p433_p1 = pnand %p432_p0, %p426_p11 }
  0x23   :  { %436 = shalt.err (!%p433_p1)
}
  0x24   :  { %s491_s13 = smov 16   ;;  %s492_s14 = smov 1  }
  0x25   :  { %23 = dma.hbm_to_vmem [thread:$0]  %s596_s0, 16, %s18_s30, [#allocation3], %s491_s13, %s491_s13, %s492_s14  }
  0x26   :  { %s493_s17 = smov [#allocation7]   ;;  %s437_s21 = scalar_lea.hbm %s599_s3, 1024 }
  0x27   :  { %s43_s18 = sshll.u32 %s493_s17, 4  ;;  %p438_p2 = scmp.ne.s32.totalorder %s599_s3, %s437_s21  ;;  %s44_s18 = int_to_ptr.vmem [resolvable:$true] %s43_s18 }
  0x28   :  { %p441_p3 = scmp.lt.u32.totalorder %s437_s21, %s599_s3 }
  0x2a   :  { %p443_p4 = pnand %p441_p3, %p438_p2 }
  0x2c   :  { %446 = shalt.err (!%p443_p4)
}
  0x2d   :  { %s447_s28 = scalar_lea.vmem %s44_s18, 1024  ;;  %p452_p6 = scmp.lt.s32.totalorder %s44_s18, %s44_s18 }
  0x2e   :  { %p448_p5 = scmp.ne.s32.totalorder %s44_s18, %s447_s28  ;;  %p453_p7 = scmp.lt.s32.totalorder %s447_s28, %s447_s28 }
  0x30   :  { %p454_p8 = por %p453_p7, %p452_p6 }
  0x32   :  { %p455_p9 = pnand %p454_p8, %p448_p5 }
  0x34   :  { %458 = shalt.err (!%p455_p9)
}
  0x35   :  { %49 = dma.hbm_to_vmem [thread:$0]  %s599_s3, 1024, %s44_s18, [#allocation6], %s488_s25, %s488_s25, %s489_s26  }
  0x36   :  { %481 = dma.done.wait [#allocation3], 64  }
  0x37   :  { %482 = vsyncadd [#allocation3], 4294967232 }
  0x38   :  { %483 = dma.done.wait [#allocation6], 1536  }
  0x39   :  { %484 = vsyncadd [#allocation6], 4294965760  ;;  %v494_v0 = vmov 0.0   ;;  %vm495_vm0 = vmmov 0   ;;  %v496_v1 = vmov 1966171168   ;;  %v88_v3 = vlaneseq }
  0x3a   :  { %334 = vmatprep.subr.bf16.mxu0 %v494_v0  ;;  %342 = vmatprep.mubr.msk.bf16.mxu0 %vm495_vm0, %v494_v0  ;;  %v86_v2 = vunpack.c.l.s4 %v496_v1  ;;  %v379_v6 = vld [vmem:[#allocation5] sm:$0xff]   ;;  %v380_v7 = vld [vmem:[#allocation5 + $0x8] sm:$0xff]   ;;  %v60_v9 = vld [vmem:[#allocation2] sm:$0x1]  ;;  %vm131_vm1 = vcmask 523264  }
  0x3b   :  { %346 = vmatprep.subr.bf16.mxu1 %v494_v0  ;;  %362 = vmatprep.mubr.msk.bf16.mxu1 %vm495_vm0, %v494_v0  ;;  %v89_v5 = vshrl.u32 %v88_v3, 7  ;;  %v61_v10 = vld [vmem:[#allocation2 + $0x1] sm:$0x1]  ;;  %v62_v11 = vld [vmem:[#allocation2 + $0x2] sm:$0x1]  ;;  %v381_v12 = vld [vmem:[#allocation5 + $0x10] sm:$0xff]  }
  0x3c   :  { %v87_v4 = vunpack.c.0.s8 %v86_v2  ;;  %335 = vmatpush3.bf16.msra.mxu0 %v379_v6  ;;  %v63_v13 = vld [vmem:[#allocation2 + $0x3] sm:$0x1]  ;;  %v83_v14 = vcombine.low %v60_v9, %v61_v10  ;;  %v383_v21 = vld [vmem:[#allocation7] sm:$0xff]   ;;  %v384_v22 = vld [vmem:[#allocation7 + $0x8] sm:$0xff]  }
  0x3d   :  { %336 = vmatprep.subr.bf16.mxu0 %v494_v0  ;;  %v84_v15 = vcombine.low %v62_v11, %v63_v13  ;;  %v382_v17 = vld [vmem:[#allocation5 + $0x18] sm:$0xff]   ;;  %347 = vmatpush3.bf16.xpose.msra.mxu1 %v383_v21  ;;  %v385_v23 = vld [vmem:[#allocation7 + $0x10] sm:$0xff]   ;;  %v387_v25 = vld [vmem:[#allocation7 + $0x20] sm:$0xff]  }
  0x3e   :  { %v90_v8 = vsub.s32 %v87_v4, %v89_v5  ;;  %348 = vmatprep.subr.bf16.mxu1 %v494_v0  ;;  %v386_v24 = vld [vmem:[#allocation7 + $0x18] sm:$0xff]   ;;  %v388_v26 = vld [vmem:[#allocation7 + $0x28] sm:$0xff]   ;;  %v389_v35 = vld [vmem:[#allocation7 + $0x30] sm:$0xff]  }
  0x3f   :  { %v306_v27 = vld [vmem:[%s598_s2] ss:$0 sm:$0xff] }
  0x40   :  { %337 = vmatpush3.bf16.msra.mxu0 %v380_v7  ;;  %v91_v16 = vrot.slane %v83_v14, %v90_v8  ;;  %v98_v18 = vrot.slane %v84_v15, %v90_v8  ;;  %v390_v36 = vld [vmem:[#allocation7 + $0x38] sm:$0xff]  }
  0x41   :  { %338 = vmatprep.subr.bf16.mxu0 %v494_v0 }
  0x42   :  { %v99_v19 = vcombine.low %v91_v16, %v98_v18 }
  0x44   :  { %339 = vmatpush3.bf16.msra.mxu0 %v381_v12  ;;  %v106_v20 = vrot.slane %v99_v19, %v90_v8 }
  0x45   :  { %340 = vmatprep.subr.bf16.mxu0 %v494_v0  ;;  %349 = vmatpush3.bf16.xpose.msra.mxu1 %v384_v22 }
  0x46   :  { %350 = vmatprep.subr.bf16.mxu1 %v494_v0 }
  0x48   :  { %341 = vmatpush3.bf16.msra.mxu0 %v382_v17 }
  0x4b   :  { %343 = vmatmul.mubr.msk.bf16.vlgmr.msra.gmra.mrb[0].mxu0 %vm131_vm1, %v106_v20 }
  0x4d   :  { %351 = vmatpush3.bf16.xpose.msra.mxu1 %v385_v23 }
  0x4e   :  { %352 = vmatprep.subr.bf16.mxu1 %v494_v0 }
  0x55   :  { %353 = vmatpush3.bf16.xpose.msra.mxu1 %v386_v24 }
  0x56   :  { %354 = vmatprep.subr.bf16.mxu1 %v494_v0 }
  0x5d   :  { %355 = vmatpush3.bf16.xpose.msra.mxu1 %v387_v25 }
  0x5e   :  { %356 = vmatprep.subr.bf16.mxu1 %v494_v0 }
  0x65   :  { %357 = vmatpush3.bf16.xpose.msra.mxu1 %v388_v26 }
  0x66   :  { %358 = vmatprep.subr.bf16.mxu1 %v494_v0 }
  0x6d   :  { %359 = vmatpush3.bf16.xpose.msra.mxu1 %v389_v35 }
  0x6e   :  { %360 = vmatprep.subr.bf16.mxu1 %v494_v0 }
  0x75   :  { %361 = vmatpush3.bf16.xpose.msra.mxu1 %v390_v36 }
 0x11e   :  { %v169_v28 = vpop.f32.mrb[0].mxu0 }
 0x11f   :  { %v170_v29 = vadd.f32 %v306_v27, %v169_v28  ;;  %v344_v30 = vpop.f32.mrb[1].mxu0 }
 0x120   :  { %v172_v31 = vpop.f32.mrb[2].mxu0 }
 0x121   :  { %v175_v32 = vmax.f32 %v170_v29, 0.0  ;;  %v345_v33 = vpop.f32.mrb[3].mxu0 }
 0x123   :  { %v176_v34 = vmul.f32 %v175_v32, %v175_v32 }
 0x125   :  { %177 = vadd.xlane.f32.xlu0 %v176_v34 }
 0x1b2   :  { %v178_v37 = vpop.xlane.xlu0 %177 }
 0x1b3   :  { %v179_v38 = vadd.f32 1e-16, %v178_v37 }
 0x1b5   :  { %391 = vrsqrt.f32 %v179_v38 }
 0x1bf   :  { %v392_v39 = vpop.eup %391 }
 0x1c0   :  { %v181_v40 = vmul.f32 %v392_v39, %v175_v32 }
 0x1c2   :  { %v182_v41 = vpack.c.bf16 %v181_v40, %v181_v40 }
 0x1c4   :  { %363 = vmatmul.mubr.bf16.vlgmr.msra.gmra.mrb[0].mxu1 %v182_v41 }
 0x297   :  { %v281_v42 = vpop.f32.mrb[0].mxu1 }
 0x298   :  { %287 = vst [vmem:[#allocation8] sm:$0xff] %v281_v42  ;;  %v364_v43 = vpop.f32.mrb[1].mxu1 }
 0x299   :  { %v284_v44 = vpop.f32.mrb[2].mxu1 }
 0x29a   :  { %v365_v45 = vpop.f32.mrb[3].mxu1 }
 0x29b   :  { %292 = vsyncadd [#allocation4], 96  ;;  %s497_s2 = smov [#allocation8]  }
 0x29c   :  { %s293_s26 = sshll.u32 %s497_s2, 4  ;;  %s294_s26 = int_to_ptr.vmem [resolvable:$true] %s293_s26 }
 0x29d   :  { %s459_s30 = scalar_lea.vmem %s294_s26, 32  ;;  %s463_s5 = scalar_lea.vmem %s294_s26, 128 }
 0x29e   :  { %p460_p10 = scmp.ne.s32.totalorder %s294_s26, %s459_s30  ;;  %p464_p11 = scmp.lt.s32.totalorder %s294_s26, %s294_s26 }
 0x29f   :  { %p465_p12 = scmp.lt.s32.totalorder %s463_s5, %s459_s30 }
 0x2a1   :  { %p466_p13 = por %p465_p12, %p464_p11 }
 0x2a3   :  { %p467_p0 = pnand %p466_p13, %p460_p10 }
 0x2a5   :  { %470 = shalt.err (!%p467_p0)
}
 0x2a6   :  { %s471_s8 = scalar_lea.hbm %s600_s4, 32 }
 0x2a7   :  { %p472_p1 = scmp.ne.s32.totalorder %s600_s4, %s471_s8  ;;  %p475_p2 = scmp.lt.u32.totalorder %s471_s8, %s600_s4 }
 0x2a9   :  { %p477_p3 = pnand %p475_p2, %p472_p1 }
 0x2ab   :  { %480 = shalt.err (!%p477_p3)
}
 0x2ac   :  { %s498_s1 = smov 32   ;;  %s499_s13 = smov 2  }
 0x2ad   :  { %299 = dma.vmem_to_hbm [thread:$0]  %s294_s26, 32, %s600_s4, [#allocation4], %s498_s1, %s498_s1, %s499_s13  }
 0x2ae   :  { %485 = dma.done.wait [#allocation4], 128  }
 0x2af   :  { %486 = vsyncadd [#allocation4], 4294967168 }
 0x2b0   :  { %303 = vsyncpa [#allocation3], 1 }
 0x2b1   :  { %304 = vsyncpa [#allocation6], 1 }
 0x2b2   :  { %305 = vsyncpa [#allocation4], 1 }

</bundles_post_ra>
